<compile_context>
chip_gen: v5e
topology: v5e:2x2
jax: 0.10.0
libtpu: 0.0.40
codegen_flags: <defaults>
</compile_context>

<pallas_src>
import jax
import jax.numpy as jnp
from jax.experimental import pallas as pl
from jax.experimental.pallas import tpu as pltpu


def _round_up(x, m):
    return (x + m - 1) // m * m


def _vmem_capacity_bytes():
    try:
        return int(pltpu.get_tpu_info().vmem_capacity_bytes)
    except Exception:
        return 128 * 1024 * 1024        # v5e / v6e default


def _pick_tiles(h_pad):
    """Generation-aware (tile_n, tile_v, vmem_limit_bytes)."""
    cap = _vmem_capacity_bytes()
    if cap >= 96 * 1024 * 1024:         # v5e / v6e: 128 MiB VMEM per core
        tn, tv, limit = 1024, 1024, 64 * 1024 * 1024
    else:                               # v7x: 64 MiB VMEM per core
        tn, tv, limit = 512, 1024, 32 * 1024 * 1024

    budget = int(limit * 0.8)

    def usage(tn_, tv_):
        return (2 * tn_ * h_pad * 2     # hidden tile, bf16, double-buffered
                + 2 * tv_ * h_pad * 2   # W tile, bf16, double-buffered
                + tn_ * tv_ * 4         # f32 logits block
                + 2 * tv_ * 4           # bias tile
                + 4 * tn_ * 4)          # accumulators + labels

    # shrink in multiples of 256 (MXU-friendly on v6e/v7x, fine on v5e)
    while usage(tn, tv) > budget and tv > 256:
        tv //= 2
    while usage(tn, tv) > budget and tn > 256:
        tn //= 2
    return tn, tv, limit


def _make_kernel(tile_n, tile_v, n_tokens, seq_len):
    """Build the tiled inverse-perplexity kernel with static sizes closed over."""

    def kernel(h_ref, w_ref, b_ref, lbl_ref, o_ref, m_sc, l_sc, g_sc):
        # h_ref:   [tile_n, H_pad]  bf16   hidden-state row tile
        # w_ref:   [tile_v, H_pad]  bf16   lm_head slab (natural [V, H] layout)
        # b_ref:   [1, tile_v]      f32    vocab bias tile (-1e9 on padded columns)
        # lbl_ref: [tile_n, 1]      i32    shifted next-token labels for this row tile
        # o_ref:   [1, 8, 128]      f32    per-row-tile partial sum of masked NLL
        # m_sc/l_sc/g_sc: [tile_n,1] f32   running max / sum-exp / label-logit scratch
        r = pl.program_id(0)
        v = pl.program_id(1)
        nv = pl.num_programs(1)

        @pl.when(v == 0)
        def _init():
            m_sc[...] = jnp.full_like(m_sc, -1e30)
            l_sc[...] = jnp.zeros_like(l_sc)
            g_sc[...] = jnp.zeros_like(g_sc)

        # bf16 operands on the MXU, f32 accumulation; both operands contract on H
        # so the W tile is one contiguous [tile_v, H_pad] HBM slab.
        logits = jax.lax.dot_general(
            h_ref[...], w_ref[...],
            dimension_numbers=(((1,), (1,)), ((), ())),
            preferred_element_type=jnp.float32,
        ) + b_ref[...]

        # ---- online logsumexp update (rescale sum-exp only) ----
        m_prev = m_sc[...]
        m_new = jnp.maximum(m_prev, jnp.max(logits, axis=-1, keepdims=True))
        alpha = jnp.exp(m_prev - m_new)
        l_sc[...] = alpha * l_sc[...] + jnp.sum(
            jnp.exp(logits - m_new), axis=-1, keepdims=True)
        m_sc[...] = m_new

        # ---- label logit: tile-local compare, no one-hot, NOT rescaled ----
        rel = lbl_ref[...] - v * tile_v                               # [tile_n, 1]
        hit = jax.lax.broadcasted_iota(jnp.int32, logits.shape, 1) == rel
        g_sc[...] += jnp.sum(jnp.where(hit, logits, 0.0), axis=-1, keepdims=True)

        @pl.when(v == nv - 1)
        def _finalize():
            # validity is a pure function of the global row index: the last
            # position of each sequence (and padded rows) contribute nothing.
            row = jax.lax.broadcasted_iota(jnp.int32, m_sc.shape, 0) + r * tile_n
            valid = jnp.logical_and(row < n_tokens,
                                    (row % seq_len) != (seq_len - 1))
            nll = jnp.where(valid,
                            m_sc[...] + jnp.log(l_sc[...]) - g_sc[...],
                            0.0)
            o_ref[...] = jnp.full(o_ref.shape, jnp.sum(nll), dtype=jnp.float32)

    return kernel


def prepare_model(embed_table, w_vocab_vh, b_vocab, *, tile_n=None, tile_v=None):
    """One-time (outside the per-call hot path) pad + bf16-cast of model params.

    embed_table: [V, H] f32    token embeddings
    w_vocab_vh:  [V, H] f32    lm_head weight in its natural PyTorch layout
    b_vocab:     [V]    f32    lm_head bias
    """
    V, H = w_vocab_vh.shape
    h_pad = _round_up(H, 128)

    tn, tv, vmem_limit = _pick_tiles(h_pad)
    if tile_n is not None:
        tn = tile_n
    if tile_v is not None:
        tv = tile_v
    tv = min(tv, _round_up(V, 128))
    v_pad = _round_up(V, tv)

    emb = embed_table.astype(jnp.bfloat16)
    if h_pad != H:
        emb = jnp.pad(emb, ((0, 0), (0, h_pad - H)))

    w = w_vocab_vh.astype(jnp.bfloat16)
    if v_pad != V or h_pad != H:
        w = jnp.pad(w, ((0, v_pad - V), (0, h_pad - H)))

    # padded vocab rows get a very negative (finite!) bias so exp underflows to 0
    b = jnp.full((1, v_pad), -1e9, jnp.float32)
    b = b.at[:, :V].set(b_vocab.reshape(1, V).astype(jnp.float32))

    return dict(emb=emb, w=w, b=b, V=V, H=H, h_pad=h_pad, v_pad=v_pad,
                tile_n=tn, tile_v=tv, vmem_limit=vmem_limit)


def inverse_perplexity(input_ids, attention_mask, prepared):
    """Returns (1/perplexity) with shape (1,), matching the PyTorch module."""
    B, S = input_ids.shape
    N = B * S
    h_pad = prepared["h_pad"]
    v_pad = prepared["v_pad"]
    tv = prepared["tile_v"]

    # ---- per-call glue (bf16 end to end; no extra f32 hidden / W copies) ----
    hidden = jnp.take(prepared["emb"], input_ids, axis=0)             # [B,S,h_pad] bf16
    hidden = hidden * attention_mask[..., None].astype(jnp.bfloat16)
    hidden_flat = hidden.reshape(N, h_pad)

    labels_next = jnp.concatenate(
        [input_ids[:, 1:], jnp.zeros((B, 1), dtype=input_ids.dtype)], axis=1
    ).reshape(N, 1).astype(jnp.int32)                                  # [N, 1]

    # row tiling: clamp to N; keep >= 2 row tiles when possible (v7x megacore)
    tn = min(prepared["tile_n"], _round_up(N, 8))
    if N >= 512:
        tn = min(tn, _round_up((N + 1) // 2, 256))
    n_pad = _round_up(N, tn)

    if n_pad != N:
        hidden_flat = jnp.pad(hidden_flat, ((0, n_pad - N), (0, 0)))
        labels_next = jnp.pad(labels_next, ((0, n_pad - N), (0, 0)))

    nr = n_pad // tn
    nv = v_pad // tv

    kernel = _make_kernel(tn, tv, N, S)

    partials = pl.pallas_call(
        kernel,
        out_shape=jax.ShapeDtypeStruct((nr, 8, 128), jnp.float32),
        grid_spec=pltpu.PrefetchScalarGridSpec(
            num_scalar_prefetch=0,
            grid=(nr, nv),
            in_specs=[
                pl.BlockSpec((tn, h_pad), lambda r, v: (r, 0)),   # hidden rows
                pl.BlockSpec((tv, h_pad), lambda r, v: (v, 0)),   # W slab [V,H]
                pl.BlockSpec((1, tv), lambda r, v: (0, v)),       # bias
                pl.BlockSpec((tn, 1), lambda r, v: (r, 0)),       # labels
            ],
            out_specs=pl.BlockSpec((1, 8, 128), lambda r, v: (r, 0, 0)),
            scratch_shapes=[
                pltpu.VMEM((tn, 1), jnp.float32),   # running max
                pltpu.VMEM((tn, 1), jnp.float32),   # running sum-exp
                pltpu.VMEM((tn, 1), jnp.float32),   # label logit
            ],
        ),
        compiler_params=pltpu.CompilerParams(
            dimension_semantics=("parallel", "arbitrary"),
            vmem_limit_bytes=prepared["vmem_limit"],
        ),
    )(hidden_flat, prepared["w"], prepared["b"], labels_next)

    # Tiny finalize: nr scalars -> mean -> exp(-loss).
    count = max(B * (S - 1), 1)                 # guard S == 1
    total_nll = jnp.sum(partials[:, 0, 0])
    loss = total_nll / jnp.float32(count)
    return jnp.exp(-loss).reshape(1)


def _reference(input_ids, attention_mask, embed_table, w_vocab_vh, b_vocab):
    """Pure-JAX reference of the same synthetic model (bf16 matmul operands,
    f32 accumulation — matching what the MXU computes in the kernel)."""
    hidden = jnp.take(embed_table, input_ids, axis=0)
    hidden = hidden * attention_mask[..., None].astype(hidden.dtype)
    h = hidden.astype(jnp.bfloat16).astype(jnp.float32)
    w = w_vocab_vh.astype(jnp.bfloat16).astype(jnp.float32)
    logits = jnp.einsum("bsh,vh->bsv", h, w,
                        precision=jax.lax.Precision.HIGHEST) + b_vocab
    shift_logits = logits[:, :-1, :]
    shift_labels = input_ids[:, 1:]
    logp = jax.nn.log_softmax(shift_logits, axis=-1)
    nll = -jnp.take_along_axis(logp, shift_labels[..., None], axis=-1)[..., 0]
    loss = jnp.mean(nll)
    return jnp.exp(-loss).reshape(1)


if __name__ == "__main__":
    key = jax.random.PRNGKey(0)
    k_ids, k_emb, k_w, k_b = jax.random.split(key, 4)

    B, S, H, V = 2, 8, 32, 128

    input_ids = jax.random.randint(k_ids, (B, S), 0, V, dtype=jnp.int32)
    attention_mask = jnp.ones((B, S), dtype=jnp.int32)

    # deterministic synthetic "model" parameters (lm_head in natural [V, H] layout)
    embed_table = jax.random.normal(k_emb, (V, H), dtype=jnp.float32) * 0.1
    w_vocab = jax.random.normal(k_w, (V, H), dtype=jnp.float32) * 0.1
    b_vocab = jax.random.normal(k_b, (V,), dtype=jnp.float32) * 0.01

    prepared = prepare_model(embed_table, w_vocab, b_vocab)
    out = inverse_perplexity(input_ids, attention_mask, prepared)
    out = jax.block_until_ready(out)

    ref = _reference(input_ids, attention_mask, embed_table, w_vocab, b_vocab)
    assert out.shape == (1,), out.shape
    assert jnp.allclose(out, ref, rtol=1e-4, atol=1e-5), (out, ref)

    print("KERNEL_OK")
</pallas_src>

<mosaic_0001>
module attributes {stable_mosaic.version = 11 : i64} {
  func.func @kernel(%arg0: i32, %arg1: i32, %arg2: memref<16x128xbf16, #tpu.memory_space<vmem>>, %arg3: memref<128x128xbf16, #tpu.memory_space<vmem>>, %arg4: memref<1x128xf32, #tpu.memory_space<vmem>>, %arg5: memref<16x1xi32, #tpu.memory_space<vmem>>, %arg6: memref<1x8x128xf32, #tpu.memory_space<vmem>>, %arg7: memref<16x1xf32, #tpu.memory_space<vmem>>, %arg8: memref<16x1xf32, #tpu.memory_space<vmem>>, %arg9: memref<16x1xf32, #tpu.memory_space<vmem>>) attributes {dimension_semantics = [#tpu.dimension_semantics<parallel>, #tpu.dimension_semantics<arbitrary>], iteration_bounds = array<i64: 1, 1>, scalar_prefetch = 0 : i64, scratch_operands = 3 : i64, tpu.core_type = #tpu.core_type<tc>, window_params = [{transform_indices = @transform_0, window_bounds = array<i64: 16, 128>}, {transform_indices = @transform_1, window_bounds = array<i64: 128, 128>}, {transform_indices = @transform_2, window_bounds = array<i64: 1, 128>}, {transform_indices = @transform_3, window_bounds = array<i64: 16, 1>}, {transform_indices = @transform_4, window_bounds = array<i64: 1, 8, 128>}]} {
    %c0_i32 = arith.constant 0 : i32
    %0 = arith.cmpi eq, %arg1, %c0_i32 : i32
    %1 = arith.extui %0 : i1 to i32
    %c0_i32_0 = arith.constant 0 : i32
    %2 = arith.cmpi ne, %1, %c0_i32_0 : i32
    scf.if %2 {
      %cst_26 = arith.constant -1.000000e+30 : f32
      %42 = vector.broadcast %cst_26 : f32 to vector<16x1xf32>
      %c0_27 = arith.constant 0 : index
      %c0_28 = arith.constant 0 : index
      %43 = vector.load %arg7[%c0_27, %c0_28] : memref<16x1xf32, #tpu.memory_space<vmem>>, vector<16x1xf32>
      tpu.vector_store %arg7[%c0_27, %c0_28], %42 {strides = array<i32>} : memref<16x1xf32, #tpu.memory_space<vmem>>, vector<16x1xf32>,
      %cst_29 = arith.constant 0.000000e+00 : f32
      %44 = vector.broadcast %cst_29 : f32 to vector<16x1xf32>
      %c0_30 = arith.constant 0 : index
      %c0_31 = arith.constant 0 : index
      %45 = vector.load %arg8[%c0_30, %c0_31] : memref<16x1xf32, #tpu.memory_space<vmem>>, vector<16x1xf32>
      tpu.vector_store %arg8[%c0_30, %c0_31], %44 {strides = array<i32>} : memref<16x1xf32, #tpu.memory_space<vmem>>, vector<16x1xf32>,
      %cst_32 = arith.constant 0.000000e+00 : f32
      %46 = vector.broadcast %cst_32 : f32 to vector<16x1xf32>
      %c0_33 = arith.constant 0 : index
      %c0_34 = arith.constant 0 : index
      %47 = vector.load %arg9[%c0_33, %c0_34] : memref<16x1xf32, #tpu.memory_space<vmem>>, vector<16x1xf32>
      tpu.vector_store %arg9[%c0_33, %c0_34], %46 {strides = array<i32>} : memref<16x1xf32, #tpu.memory_space<vmem>>, vector<16x1xf32>,
    } else {
    }
    %c0 = arith.constant 0 : index
    %c0_1 = arith.constant 0 : index
    %3 = vector.load %arg2[%c0, %c0_1] : memref<16x128xbf16, #tpu.memory_space<vmem>>, vector<16x128xbf16>
    %c0_2 = arith.constant 0 : index
    %c0_3 = arith.constant 0 : index
    %4 = vector.load %arg3[%c0_2, %c0_3] : memref<128x128xbf16, #tpu.memory_space<vmem>>, vector<128x128xbf16>
    %cst = arith.constant dense<0.000000e+00> : vector<16x128xf32>
    %5 = tpu.matmul %3, %4, %cst {dimension_numbers = #tpu.dot_dimension_numbers<[1], [1], [0], [0], [0, 0, 1, 0], [], []>} : vector<16x128xbf16>, vector<128x128xbf16>, vector<16x128xf32> -> vector<16x128xf32>
    %c0_4 = arith.constant 0 : index
    %c0_5 = arith.constant 0 : index
    %6 = vector.load %arg4[%c0_4, %c0_5] : memref<1x128xf32, #tpu.memory_space<vmem>>, vector<1x128xf32>
    %7 = vector.broadcast %6 : vector<1x128xf32> to vector<16x128xf32>
    %8 = arith.addf %5, %7 : vector<16x128xf32>
    %c0_6 = arith.constant 0 : index
    %c0_7 = arith.constant 0 : index
    %9 = vector.load %arg7[%c0_6, %c0_7] : memref<16x1xf32, #tpu.memory_space<vmem>>, vector<16x1xf32>
    %cst_8 = arith.constant dense<0xFF800000> : vector<16xf32>
    %10 = vector.multi_reduction <maximumf>, %8, %cst_8 [1] : vector<16x128xf32> to vector<16xf32>
    %11 = vector.shape_cast %10 : vector<16xf32> to vector<16x1xf32>
    %12 = arith.maximumf %9, %11 : vector<16x1xf32>
    %13 = arith.subf %9, %12 : vector<16x1xf32>
    %14 = math.exp %13 : vector<16x1xf32>
    %c0_9 = arith.constant 0 : index
    %c0_10 = arith.constant 0 : index
    %15 = vector.load %arg8[%c0_9, %c0_10] : memref<16x1xf32, #tpu.memory_space<vmem>>, vector<16x1xf32>
    %16 = arith.mulf %14, %15 : vector<16x1xf32>
    %17 = vector.broadcast %12 : vector<16x1xf32> to vector<16x128xf32>
    %18 = arith.subf %8, %17 : vector<16x128xf32>
    %19 = math.exp %18 : vector<16x128xf32>
    %cst_11 = arith.constant dense<0.000000e+00> : vector<16xf32>
    %20 = vector.multi_reduction <add>, %19, %cst_11 [1] : vector<16x128xf32> to vector<16xf32>
    %21 = vector.shape_cast %20 : vector<16xf32> to vector<16x1xf32>
    %22 = arith.addf %16, %21 : vector<16x1xf32>
    %c0_12 = arith.constant 0 : index
    %c0_13 = arith.constant 0 : index
    %23 = vector.load %arg8[%c0_12, %c0_13] : memref<16x1xf32, #tpu.memory_space<vmem>>, vector<16x1xf32>
    tpu.vector_store %arg8[%c0_12, %c0_13], %22 {strides = array<i32>} : memref<16x1xf32, #tpu.memory_space<vmem>>, vector<16x1xf32>,
    %c0_14 = arith.constant 0 : index
    %c0_15 = arith.constant 0 : index
    %24 = vector.load %arg7[%c0_14, %c0_15] : memref<16x1xf32, #tpu.memory_space<vmem>>, vector<16x1xf32>
    tpu.vector_store %arg7[%c0_14, %c0_15], %12 {strides = array<i32>} : memref<16x1xf32, #tpu.memory_space<vmem>>, vector<16x1xf32>,
    %c0_16 = arith.constant 0 : index
    %c0_17 = arith.constant 0 : index
    %25 = vector.load %arg5[%c0_16, %c0_17] : memref<16x1xi32, #tpu.memory_space<vmem>>, vector<16x1xi32>
    %c128_i32 = arith.constant 128 : i32
    %26 = arith.muli %arg1, %c128_i32 : i32
    %27 = vector.broadcast %26 : i32 to vector<16x1xi32>
    %28 = arith.subi %25, %27 : vector<16x1xi32>
    %29 = tpu.iota {dimensions = array<i32: 1>} : vector<16x128xi32>
    %30 = vector.broadcast %28 : vector<16x1xi32> to vector<16x128xi32>
    %31 = arith.cmpi eq, %29, %30 : vector<16x128xi32>
    %c0_18 = arith.constant 0 : index
    %c0_19 = arith.constant 0 : index
    %32 = vector.load %arg9[%c0_18, %c0_19] : memref<16x1xf32, #tpu.memory_space<vmem>>, vector<16x1xf32>
    %cst_20 = arith.constant 0.000000e+00 : f32
    %33 = vector.broadcast %cst_20 : f32 to vector<16x128xf32>
    %34 = arith.select %31, %8, %33 : vector<16x128xi1>, vector<16x128xf32>
    %cst_21 = arith.constant dense<0.000000e+00> : vector<16xf32>
    %35 = vector.multi_reduction <add>, %34, %cst_21 [1] : vector<16x128xf32> to vector<16xf32>
    %36 = vector.shape_cast %35 : vector<16xf32> to vector<16x1xf32>
    %37 = arith.addf %32, %36 : vector<16x1xf32>
    %c0_22 = arith.constant 0 : index
    %c0_23 = arith.constant 0 : index
    %38 = vector.load %arg9[%c0_22, %c0_23] : memref<16x1xf32, #tpu.memory_space<vmem>>, vector<16x1xf32>
    tpu.vector_store %arg9[%c0_22, %c0_23], %37 {strides = array<i32>} : memref<16x1xf32, #tpu.memory_space<vmem>>, vector<16x1xf32>,
    %c0_i32_24 = arith.constant 0 : i32
    %39 = arith.cmpi eq, %arg1, %c0_i32_24 : i32
    %40 = arith.extui %39 : i1 to i32
    %c0_i32_25 = arith.constant 0 : i32
    %41 = arith.cmpi ne, %40, %c0_i32_25 : i32
    scf.if %41 {
      %42 = tpu.iota {dimensions = array<i32: 0>} : vector<16x1xi32>
      %c16_i32 = arith.constant 16 : i32
      %43 = arith.muli %arg0, %c16_i32 : i32
      %44 = vector.broadcast %43 : i32 to vector<16x1xi32>
      %45 = arith.addi %42, %44 : vector<16x1xi32>
      %c16_i32_26 = arith.constant 16 : i32
      %46 = vector.broadcast %c16_i32_26 : i32 to vector<16x1xi32>
      %47 = arith.cmpi slt, %45, %46 : vector<16x1xi32>
      %c8_i32 = arith.constant 8 : i32
      %c0_i32_27 = arith.constant 0 : i32
      %48 = arith.cmpi eq, %c8_i32, %c0_i32_27 : i32
      %c1_i32 = arith.constant 1 : i32
      %49 = arith.select %48, %c1_i32, %c8_i32 : i32
      %50 = vector.broadcast %49 : i32 to vector<16x1xi32>
      %51 = arith.remsi %45, %50 : vector<16x1xi32>
      %c0_i32_28 = arith.constant 0 : i32
      %52 = vector.broadcast %c0_i32_28 : i32 to vector<16x1xi32>
      %53 = arith.cmpi ne, %51, %52 : vector<16x1xi32>
      %c0_i32_29 = arith.constant 0 : i32
      %54 = vector.broadcast %c0_i32_29 : i32 to vector<16x1xi32>
      %55 = arith.cmpi slt, %51, %54 : vector<16x1xi32>
      %c0_i32_30 = arith.constant 0 : i32
      %56 = arith.cmpi slt, %49, %c0_i32_30 : i32
      %57 = vector.broadcast %56 : i1 to vector<16x1xi1>
      %58 = vector.broadcast %57 : vector<16x1xi1> to vector<16x1xi1>
      %59 = arith.xori %55, %58 : vector<16x1xi1>
      %60 = arith.andi %59, %53 : vector<16x1xi1>
      %61 = vector.broadcast %49 : i32 to vector<16x1xi32>
      %62 = arith.addi %51, %61 : vector<16x1xi32>
      %63 = arith.select %60, %62, %51 : vector<16x1xi1>, vector<16x1xi32>
      %c7_i32 = arith.constant 7 : i32
      %64 = vector.broadcast %c7_i32 : i32 to vector<16x1xi32>
      %65 = arith.cmpi ne, %63, %64 : vector<16x1xi32>
      %66 = arith.andi %47, %65 : vector<16x1xi1>
      %c0_31 = arith.constant 0 : index
      %c0_32 = arith.constant 0 : index
      %67 = vector.load %arg7[%c0_31, %c0_32] : memref<16x1xf32, #tpu.memory_space<vmem>>, vector<16x1xf32>
      %c0_33 = arith.constant 0 : index
      %c0_34 = arith.constant 0 : index
      %68 = vector.load %arg8[%c0_33, %c0_34] : memref<16x1xf32, #tpu.memory_space<vmem>>, vector<16x1xf32>
      %69 = math.log %68 : vector<16x1xf32>
      %70 = arith.addf %67, %69 : vector<16x1xf32>
      %c0_35 = arith.constant 0 : index
      %c0_36 = arith.constant 0 : index
      %71 = vector.load %arg9[%c0_35, %c0_36] : memref<16x1xf32, #tpu.memory_space<vmem>>, vector<16x1xf32>
      %72 = arith.subf %70, %71 : vector<16x1xf32>
      %cst_37 = arith.constant 0.000000e+00 : f32
      %73 = vector.broadcast %cst_37 : f32 to vector<16x1xf32>
      %74 = arith.select %66, %72, %73 : vector<16x1xi1>, vector<16x1xf32>
      %75 = vector.shape_cast %74 : vector<16x1xf32> to vector<1x16x1xf32>
      %cst_38 = arith.constant dense<0.000000e+00> : vector<1xf32>
      %76 = vector.multi_reduction <add>, %75, %cst_38 [1, 2] : vector<1x16x1xf32> to vector<1xf32>
      %77 = vector.shape_cast %76 : vector<1xf32> to vector<1x1x1xf32>
      %78 = vector.extract %77[0, 0, 0] : f32 from vector<1x1x1xf32>
      %79 = vector.broadcast %78 : f32 to vector<1x8x128xf32>
      %c0_39 = arith.constant 0 : index
      %c0_40 = arith.constant 0 : index
      %c0_41 = arith.constant 0 : index
      %80 = vector.load %arg6[%c0_39, %c0_40, %c0_41] : memref<1x8x128xf32, #tpu.memory_space<vmem>>, vector<1x8x128xf32>
      tpu.vector_store %arg6[%c0_39, %c0_40, %c0_41], %79 {strides = array<i32>} : memref<1x8x128xf32, #tpu.memory_space<vmem>>, vector<1x8x128xf32>,
    } else {
    }
    return
  }
  func.func @transform_0(%arg0: i32, %arg1: i32) -> (i32, i32) {
    %c0_i32 = arith.constant 0 : i32
    %c0_i32_0 = arith.constant 0 : i32
    return %arg0, %c0_i32 : i32, i32
  }
  func.func @transform_1(%arg0: i32, %arg1: i32) -> (i32, i32) {
    %c0_i32 = arith.constant 0 : i32
    %c0_i32_0 = arith.constant 0 : i32
    return %arg1, %c0_i32 : i32, i32
  }
  func.func @transform_2(%arg0: i32, %arg1: i32) -> (i32, i32) {
    %c0_i32 = arith.constant 0 : i32
    %c0_i32_0 = arith.constant 0 : i32
    return %c0_i32, %arg1 : i32, i32
  }
  func.func @transform_3(%arg0: i32, %arg1: i32) -> (i32, i32) {
    %c0_i32 = arith.constant 0 : i32
    %c0_i32_0 = arith.constant 0 : i32
    return %arg0, %c0_i32 : i32, i32
  }
  func.func @transform_4(%arg0: i32, %arg1: i32) -> (i32, i32, i32) {
    %c0_i32 = arith.constant 0 : i32
    %c0_i32_0 = arith.constant 0 : i32
    %c0_i32_1 = arith.constant 0 : i32
    return %arg0, %c0_i32, %c0_i32_0 : i32, i32, i32
  }
}

</mosaic_0001>

<bundles_post_ra>
// kernel: tpu_custom_call.1
= control target key start
LH: loop header
LB: loop body
LE: loop exit
PB: predicated region body
PF: predicated region fallthrough
CT: control target
= control target key end

     0   :  { %9 = vsyncpa [#allocation6], 0  ;;  %s483_s0 = inlined_call_operand.vmem [shape: bf16[16,128], index: 0, kind: input, shape index: {}]   ;;  %s484_s1 = inlined_call_operand.hbm [shape: bf16[128,128], index: 1, kind: input, shape index: {}]   ;;  %s485_s2 = inlined_call_operand.vmem [shape: f32[1,128], index: 2, kind: input, shape index: {}]   ;;  %s486_s3 = inlined_call_operand.vmem [shape: s32[16,1], index: 3, kind: input, shape index: {}]   ;;  %s487_s4 = inlined_call_operand.hbm [shape: f32[1,8,128], index: 4, kind: output, shape index: {}]  }
   0x1   :  { %10 = vsyncpa [#allocation7], 0  ;;  %s17_s17 = sshll.u32 %s484_s1, 4  ;;  %s417_s18 = smov [#allocation5]   ;;  %s18_s17 = int_to_ptr.hbm [resolvable:$true] %s17_s17 }
   0x2   :  { %s19_s19 = sshll.u32 %s417_s18, 4  ;;  %s418_s20 = smov 64   ;;  %s20_s19 = int_to_ptr.vmem [resolvable:$true] %s19_s19 }
   0x3   :  { %s419_s21 = smov 4  }
   0x4   :  { %25 = dma.hbm_to_vmem [thread:$0]  %s18_s17, 1024, %s20_s19, [#allocation6], %s418_s20, %s418_s20, %s419_s21  }
   0x5   :  { %413 = dma.done.wait [#allocation6], 1024  }
   0x6   :  { %414 = vsyncadd [#allocation6], 4294966272  ;;  %v339_v0 = vld [vmem:[#allocation5 + $0x38] sm:$0xff]  ;;  %v338_v1 = vld [vmem:[#allocation5 + $0x30] sm:$0xff]  ;;  %v420_v6 = vmov 0   ;;  %vm38_vm0 = vcmask 7168   ;;  %v186_v13 = vlaneseq }
   0x7   :  { %121 = vmatpush.bf16.xpose.msra.mxu0 %v339_v0  ;;  %v337_v2 = vld [vmem:[#allocation5 + $0x28] sm:$0xff]  ;;  %v336_v3 = vld [vmem:[#allocation5 + $0x20] sm:$0xff]  ;;  %v335_v4 = vld [vmem:[#allocation5 + $0x18] sm:$0xff]  ;;  %350 = vset.pattern.permute.xlu2 %v420_v6  ;;  %v421_v12 = vmov -1e+30   ;;  %v422_v22 = vmov 0.0  }
   0x8   :  { %v180_v5 = vld [vmem:[%s486_s3] sm:$0xff]  ;;  %349 = vset.pattern.permute.xlu1 %v420_v6  ;;  %351 = vset.pattern.permute.xlu0 %v420_v6  ;;  %v181_v8 = vld [vmem:[%s486_s3 + $0x8] sm:$0xff]  ;;  %v333_v9 = vld [vmem:[#allocation5 + $0x8] sm:$0xff]  ;;  %39 = vst.msk [vmem:[#allocation2] sm:$0xff] %vm38_vm0, %v421_v12  ;;  %v187_v14 = vand.u32 127, %v186_v13  ;;  %v212_v63 = vshrl.u32 %v186_v13, 7 }
   0x9   :  { %189 = vperm.xlu2 %350, %v180_v5   ;;  %v334_v7 = vld [vmem:[#allocation5 + $0x10] sm:$0xff]  ;;  %v332_v10 = vld [vmem:[#allocation5] sm:$0xff]  ;;  %40 = vst.msk [vmem:[#allocation2 + $0x8] sm:$0xff] %vm38_vm0, %v421_v12  ;;  %s285_s30 = sshll.u32 %s487_s4, 4  ;;  %s286_s30 = int_to_ptr.hbm [resolvable:$true] %s285_s30 }
   0xa   :  { %v331_v11 = vld [vmem:[%s483_s0] sm:$0xff]  ;;  %43 = vst.msk [vmem:[#allocation4] sm:$0xff] %vm38_vm0, %v422_v22  ;;  %v213_v0 = vadd.s32 8, %v212_v63  ;;  %s423_s0 = smov [#allocation8]  }
   0xb   :  { %v352_v15 = vld [vmem:[%s485_s2] ss:$0 sm:$0xff]  ;;  %41 = vst.msk [vmem:[#allocation3] sm:$0xff] %vm38_vm0, %v422_v22  ;;  %s283_s2 = sshll.u32 %s423_s0, 4  ;;  %s284_s2 = int_to_ptr.vmem [resolvable:$true] %s283_s2 }
   0xc   :  { %42 = vst.msk [vmem:[#allocation3 + $0x8] sm:$0xff] %vm38_vm0, %v422_v22  ;;  %v231_v5 = vand.u32 7, %v213_v0 }
   0xd   :  { %44 = vst.msk [vmem:[#allocation4 + $0x8] sm:$0xff] %vm38_vm0, %v422_v22 }
   0xe   :  { %vm245_vm4 = vcmp.ne.s32.totalorder %v231_v5, 7 }
   0xf   :  { %122 = vmatpush.bf16.xpose.msra.mxu0 %v338_v1  ;;  %v135_v24 = vld [vmem:[#allocation2] sm:$0xff] }
  0x10   :  { %v136_v31 = vld [vmem:[#allocation2 + $0x8] sm:$0xff] }
  0x11   :  { %192 = vperm.xlu2 %350, %v181_v8   ;;  %v196_v25 = vld [vmem:[#allocation4] sm:$0xff] }
  0x12   :  { %v149_v47 = vld [vmem:[#allocation3] sm:$0xff] }
  0x13   :  { %v150_v52 = vld [vmem:[#allocation3 + $0x8] sm:$0xff] }
  0x14   :  { %v197_v53 = vld [vmem:[#allocation4 + $0x8] sm:$0xff] }
  0x17   :  { %123 = vmatpush.bf16.xpose.msra.mxu0 %v337_v2 }
  0x1f   :  { %124 = vmatpush.bf16.xpose.msra.mxu0 %v336_v3  ;;  %v224_v3 = vand.u32 7, %v212_v63 }
  0x21   :  { %vm244_vm3 = vcmp.ne.s32.totalorder %v224_v3, 7 }
  0x27   :  { %125 = vmatpush.bf16.xpose.msra.mxu0 %v335_v4 }
  0x2f   :  { %126 = vmatpush.bf16.xpose.msra.mxu0 %v334_v7 }
  0x37   :  { %127 = vmatpush.bf16.xpose.msra.mxu0 %v333_v9 }
  0x3f   :  { %128 = vmatpush.bf16.xpose.msra.mxu0 %v332_v10 }
  0x46   :  { %129 = vmatmul.bf16.vlgmr.msra.gmra.mxu0 %v331_v11 }
  0x63   :  { %v190_v16 = vpop.permute.xlu2 %189 }
  0x64   :  { %vm194_vm1 = vcmp.eq.s32.totalorder %v187_v14, %v190_v16 }
  0x6b   :  { %v193_v23 = vpop.permute.xlu2 %192 }
  0x6c   :  { %vm195_vm2 = vcmp.eq.s32.totalorder %v187_v14, %v193_v23 }
  0xc3   :  { %v130_v17 = vpop.f32.mrf.mxu0 }
  0xc4   :  { %v131_v18 = vadd.f32 %v352_v15, %v130_v17 }
  0xc6   :  { %137 = vmax.xlane.f32.xlu0 %v131_v18  ;;  %v198_v19 = vsel %vm194_vm1, %v131_v18, 0.0 }
  0xc7   :  { %200 = vadd.xlane.f32.xlu2 %v198_v19 }
  0xcb   :  { %v132_v20 = vpop.f32.mrf.mxu0 }
  0xcc   :  { %v133_v21 = vadd.f32 %v352_v15, %v132_v20 }
  0xce   :  { %139 = vmax.xlane.f32.xlu0 %v133_v21  ;;  %v199_v43 = vsel %vm195_vm2, %v133_v21, 0.0 }
 0x139   :  { %v138_v26 = vpop.xlane.xlu0 %137 }
 0x13a   :  { %v141_v27 = vmax.f32 %v135_v24, %v138_v26  ;;  %v201_v28 = vpop.xlane.xlu2 %200 }
 0x13b   :  { %v204_v29 = vadd.f32 %v201_v28, %v196_v25 }
 0x13c   :  { %v143_v30 = vsub.f32 %v135_v24, %v141_v27  ;;  %178 = vst.msk [vmem:[#allocation2] sm:$0xff] %vm38_vm0, %v141_v27  ;;  %155 = vperm.xlu1 %349, %v141_v27  }
 0x13d   :  { %206 = vst.msk [vmem:[#allocation4] sm:$0xff] %vm38_vm0, %v204_v29 }
 0x13e   :  { %v145_v44 = vmul.f32 1.442695, %v143_v30 }
 0x141   :  { %v140_v32 = vpop.xlane.xlu0 %139 }
 0x142   :  { %v142_v33 = vmax.f32 %v136_v31, %v140_v32 }
 0x143   :  { %v248_v1 = vld [vmem:[#allocation2] sm:$0xff] }
 0x144   :  { %v144_v34 = vsub.f32 %v136_v31, %v142_v33  ;;  %179 = vst.msk [vmem:[#allocation2 + $0x8] sm:$0xff] %vm38_vm0, %v142_v33  ;;  %160 = vperm.xlu1 %349, %v142_v33   ;;  %v258_v6 = vld [vmem:[#allocation4] sm:$0xff] }
 0x146   :  { %v147_v45 = vmul.f32 1.442695, %v144_v34 }
 0x14b   :  { %v249_v9 = vld [vmem:[#allocation2 + $0x8] sm:$0xff] }
 0x1ae   :  { %v156_v35 = vpop.permute.xlu1 %155 }
 0x1af   :  { %v163_v36 = vsub.f32 %v131_v18, %v156_v35 }
 0x1b1   :  { %v165_v37 = vmul.f32 1.442695, %v163_v36 }
 0x1b3   :  { %353 = vpow2.f32 %v165_v37 }
 0x1b6   :  { %v161_v38 = vpop.permute.xlu1 %160 }
 0x1b7   :  { %v164_v39 = vsub.f32 %v133_v21, %v161_v38 }
 0x1b9   :  { %v354_v40 = vpop.eup %353  ;;  %v167_v41 = vmul.f32 1.442695, %v164_v39 }
 0x1ba   :  { %169 = vadd.xlane.f32.xlu0 %v354_v40 }
 0x1bb   :  { %355 = vpow2.f32 %v167_v41 }
 0x1bc   :  { %357 = vpow2.f32 %v145_v44 }
 0x1bd   :  { %359 = vpow2.f32 %v147_v45 }
 0x1c1   :  { %v356_v42 = vpop.eup %355 }
 0x1c2   :  { %202 = vadd.xlane.f32.xlu0 %v199_v43  ;;  %171 = vadd.xlane.f32.xlu1 %v356_v42  ;;  %v358_v46 = vpop.eup %357 }
 0x1c3   :  { %v151_v48 = vmul.f32 %v358_v46, %v149_v47  ;;  %v360_v51 = vpop.eup %359 }
 0x1c4   :  { %v152_v54 = vmul.f32 %v360_v51, %v150_v52 }
 0x22d   :  { %v170_v49 = vpop.xlane.xlu0 %169 }
 0x22e   :  { %v173_v50 = vadd.f32 %v170_v49, %v151_v48 }
 0x230   :  { %176 = vst.msk [vmem:[#allocation3] sm:$0xff] %vm38_vm0, %v173_v50 }
 0x235   :  { %v203_v55 = vpop.xlane.xlu0 %202  ;;  %v172_v56 = vpop.xlane.xlu1 %171 }
 0x236   :  { %v205_v57 = vadd.f32 %v203_v55, %v197_v53  ;;  %v174_v58 = vadd.f32 %v172_v56, %v152_v54 }
 0x237   :  { %v250_v59 = vld [vmem:[#allocation3] sm:$0xff] }
 0x238   :  { %207 = vst.msk [vmem:[#allocation4 + $0x8] sm:$0xff] %vm38_vm0, %v205_v57  ;;  %361 = vlog2.f32 %v250_v59 }
 0x239   :  { %177 = vst.msk [vmem:[#allocation3 + $0x8] sm:$0xff] %vm38_vm0, %v174_v58 }
 0x23e   :  { %v362_v60 = vpop.eup %361 }
 0x23f   :  { %v253_v62 = vmul.f32 0.6931472, %v362_v60  ;;  %v259_v11 = vld [vmem:[#allocation4 + $0x8] sm:$0xff] }
 0x240   :  { %v251_v61 = vld [vmem:[#allocation3 + $0x8] sm:$0xff] }
 0x241   :  { %363 = vlog2.f32 %v251_v61  ;;  %v256_v2 = vadd.f32 %v253_v62, %v248_v1 }
 0x243   :  { %v260_v8 = vsub.f32 %v256_v2, %v258_v6 }
 0x245   :  { %v262_v14 = vsel %vm244_vm3, %v260_v8, 0.0 }
 0x246   :  { %v264_v13 = vsel %vm38_vm0, %v262_v14, 0.0 }
 0x247   :  { %v364_v4 = vpop.eup %363 }
 0x248   :  { %v255_v7 = vmul.f32 0.6931472, %v364_v4 }
 0x24a   :  { %v257_v10 = vadd.f32 %v255_v7, %v249_v9 }
 0x24c   :  { %v261_v12 = vsub.f32 %v257_v10, %v259_v11 }
 0x24e   :  { %v263_v15 = vsel %vm245_vm4, %v261_v12, 0.0 }
 0x24f   :  { %v265_v16 = vsel %vm38_vm0, %v263_v15, 0.0 }
 0x250   :  { %v266_v17 = vadd.f32 %v265_v16, %v264_v13 }
 0x252   :  { %267 = vadd.xlane.f32.xlu0 %v266_v17 }
 0x2c5   :  { %v268_v18 = vpop.xlane.xlu0 %267 }
 0x2c6   :  { %v269_v19 = vrot.slane %v268_v18, 4 }
 0x2c8   :  { %v270_v20 = vadd.f32 %v269_v19, %v268_v18 }
 0x2ca   :  { %v271_v21 = vrot.slane %v270_v20, 2 }
 0x2cc   :  { %v272_v22 = vadd.f32 %v271_v21, %v270_v20 }
 0x2ce   :  { %v273_v23 = vrot.slane %v272_v22, 1 }
 0x2d0   :  { %v274_v24 = vadd.f32 %v273_v23, %v272_v22 }
 0x2d2   :  { %340 = vpush %v274_v24 }
 0x303   :  { %s341_s5 = spop %340 }
 0x304   :  { %v276_v25 = vstv %s341_s5 }
 0x305   :  { %277 = vst [vmem:[#allocation8] sm:$0xff] %v276_v25 }
 0x306   :  { %288 = dma.vmem_to_hbm [thread:$0]  %s284_s2, 128, %s286_s30, [#allocation7]  }
 0x307   :  { %415 = dma.done.wait [#allocation7], 128  }
 0x308   :  { %416 = vsyncadd [#allocation7], 4294967168 }
 0x309   :  { %293 = vsyncpa [#allocation6], 1 }
 0x30a   :  { %294 = vsyncpa [#allocation7], 1 }

</bundles_post_ra>
